<compile_context>
chip_gen: v6e
topology: v6e:2x2x1
jax: 0.10.0
libtpu: 0.0.40
codegen_flags: <defaults>
</compile_context>

<pallas_src>
import jax
import jax.numpy as jnp
from jax.experimental import pallas as pl
from jax.experimental.pallas import tpu as pltpu

NUM_DIM = 32        # input feature dim (num_dim in the reference module)
HIDDEN = 16         # self.hidden_dim
NUM_CLASS = 8       # num_class in the reference module
NEG_SLOPE = 0.01    # nn.LeakyReLU() default

FOLD = 4                      # rows folded side-by-side onto the lane axis
LANES_IN = FOLD * NUM_DIM     # 128  (fully lane-dense input)
LANES_H = FOLD * HIDDEN       # 64
LANES_OUT = FOLD * NUM_CLASS  # 32

MAX_TILE_ROWS = 2048          # folded rows per grid step (= 8192 original rows)
MIN_GRID_STEPS = 4            # keep >=4 steps for megacore sharding on v7x


def _leaky_relu(x):
    return jnp.where(x > 0, x, NEG_SLOPE * x)


def mlp_kernel(x_ref, w1_ref, b1_ref, w2_ref, b2_ref, w3_ref, b3_ref, ones_ref, o_ref):
    # x block: (tile_rows, 128) = 4 original rows folded per vreg row.
    x = x_ref[...]
    if x.dtype != jnp.float32:          # trace-time no-op for f32 inputs
        x = x.astype(jnp.float32)

    # lin1 + LeakyReLU (dropout = identity in eval mode). Block-diagonal weights
    # keep the 4 folded samples independent while using full MXU/VPU lanes.
    h = jnp.dot(x, w1_ref[...], preferred_element_type=jnp.float32) + b1_ref[...]
    h = _leaky_relu(h)

    # lin2 + LeakyReLU
    h = jnp.dot(h, w2_ref[...], preferred_element_type=jnp.float32) + b2_ref[...]
    h = _leaky_relu(h)

    # lin3 -> logits, lanes [8g:8g+8] hold the 8 class logits of folded sample g.
    logits = jnp.dot(h, w3_ref[...], preferred_element_type=jnp.float32) + b3_ref[...]

    # log_softmax per 8-lane class group:
    #  - shift by the per-row (32-lane) max: one dense XLU reduce; it upper-bounds
    #    every group max, so exp never overflows,
    #  - group-sum of exp via a block-of-ones matmul on the MXU (broadcasts the
    #    sum back to all 8 lanes of the group),
    #  - clamp guards exp-sum underflow (only possible if two samples folded into
    #    the same row have logits differing by > ~88 — pathological inputs).
    m = jnp.max(logits, axis=-1, keepdims=True)
    shifted = logits - m
    e = jnp.exp(shifted)
    gsum = jnp.dot(e, ones_ref[...], preferred_element_type=jnp.float32)
    gsum = jnp.maximum(gsum, 1e-30)
    o_ref[...] = (shifted - jnp.log(gsum)).astype(o_ref.dtype)


def _resident(arr):
    # Full-array block with a constant index_map: DMA'd once, stays in VMEM.
    return pl.BlockSpec(arr.shape, lambda i: (0, 0))


def _choose_tile_rows(n4):
    """Folded-rows-per-step: big tiles to amortize the ~0.35us step overhead,
    but at least MIN_GRID_STEPS steps for large N so v7x's two TCs both get work."""
    if n4 <= 1024:
        return n4                                   # single full block (always legal)
    t = min(MAX_TILE_ROWS, pl.cdiv(n4, MIN_GRID_STEPS))
    return max(8, (t // 8) * 8)


def mlp_forward(x, params, *, tile_rows=None):
    w1, b1, w2, b2, w3, b3 = params
    N = x.shape[0]
    assert x.shape[1] == NUM_DIM

    # Pad N up to a multiple of FOLD so the lane-fold reshape is exact; padded
    # rows are zeros (finite everywhere in-kernel) and are sliced off at the end.
    pad = (-N) % FOLD
    if pad:
        x = jnp.concatenate([x, jnp.zeros((pad, NUM_DIM), x.dtype)], axis=0)
    n4 = (N + pad) // FOLD
    x4 = x.reshape(n4, LANES_IN)        # free, contiguous: rows 4r..4r+3 side by side

    # 4-way block-diagonal weights / lane-replicated biases (tiny, built per call).
    eye = jnp.eye(FOLD, dtype=jnp.float32)
    w1bd = jnp.kron(eye, w1.astype(jnp.float32))                              # (128, 64)
    w2bd = jnp.kron(eye, w2.astype(jnp.float32))                              # (64, 64)
    w3bd = jnp.kron(eye, w3.astype(jnp.float32))                              # (64, 32)
    b1r = jnp.tile(b1.reshape(1, HIDDEN).astype(jnp.float32), (1, FOLD))      # (1, 64)
    b2r = jnp.tile(b2.reshape(1, HIDDEN).astype(jnp.float32), (1, FOLD))      # (1, 64)
    b3r = jnp.tile(b3.reshape(1, NUM_CLASS).astype(jnp.float32), (1, FOLD))   # (1, 32)
    gones = jnp.kron(eye, jnp.ones((NUM_CLASS, NUM_CLASS), jnp.float32))      # (32, 32)

    if tile_rows is None:
        tr = _choose_tile_rows(n4)
    else:
        tr = min(tile_rows, n4)
        if tr < n4 and tr % 8:
            tr = max(8, (tr // 8) * 8)
    grid = (pl.cdiv(n4, tr),)

    # Scheduling hint for XLA around the custom call.
    flops = 2 * n4 * (LANES_IN * LANES_H + LANES_H * LANES_H
                      + LANES_H * LANES_OUT + LANES_OUT * LANES_OUT)
    transcendentals = n4 * 2 * LANES_OUT                      # exp + log per lane
    bytes_accessed = (x4.size * x4.dtype.itemsize + n4 * LANES_OUT * 4
                      + 4 * (w1bd.size + w2bd.size + w3bd.size + gones.size
                             + b1r.size + b2r.size + b3r.size))

    out4 = pl.pallas_call(
        mlp_kernel,
        out_shape=jax.ShapeDtypeStruct((n4, LANES_OUT), jnp.float32),
        grid=grid,
        in_specs=[
            pl.BlockSpec((tr, LANES_IN), lambda i: (i, 0)),   # x: row-tiled, lane-dense
            _resident(w1bd), _resident(b1r),
            _resident(w2bd), _resident(b2r),
            _resident(w3bd), _resident(b3r),
            _resident(gones),
        ],
        out_specs=pl.BlockSpec((tr, LANES_OUT), lambda i: (i, 0)),
        compiler_params=pltpu.CompilerParams(
            dimension_semantics=("parallel",),
            vmem_limit_bytes=48 * 1024 * 1024,                # fits v7x's 64 MiB/TC
        ),
        cost_estimate=pl.CostEstimate(
            flops=flops, transcendentals=transcendentals, bytes_accessed=bytes_accessed),
    )(x4, w1bd, b1r, w2bd, b2r, w3bd, b3r, gones)

    # Free unfold back to (N, num_class); drop the padded rows.
    return out4.reshape(n4 * FOLD, NUM_CLASS)[:N]


def init_params(key):
    # Deterministic synthetic init (PyTorch-style uniform fan-in bound).
    ks = jax.random.split(key, 6)

    def lin(kw, kb, fan_in, fan_out):
        bound = 1.0 / jnp.sqrt(fan_in)
        # stored as (in, out) i.e. transpose of torch's (out, in)
        w = jax.random.uniform(kw, (fan_in, fan_out), jnp.float32, -bound, bound)
        b = jax.random.uniform(kb, (1, fan_out), jnp.float32, -bound, bound)
        return w, b

    w1, b1 = lin(ks[0], ks[1], NUM_DIM, HIDDEN)
    w2, b2 = lin(ks[2], ks[3], HIDDEN, HIDDEN)
    w3, b3 = lin(ks[4], ks[5], HIDDEN, NUM_CLASS)
    return (w1, b1, w2, b2, w3, b3)


def mlp_reference(x, params):
    w1, b1, w2, b2, w3, b3 = params
    hp = jax.lax.Precision.HIGHEST
    xf = x.astype(jnp.float32)
    h = _leaky_relu(jnp.dot(xf, w1, precision=hp) + b1)
    h = _leaky_relu(jnp.dot(h, w2, precision=hp) + b2)
    logits = jnp.dot(h, w3, precision=hp) + b3
    return jax.nn.log_softmax(logits, axis=1)


if __name__ == "__main__":
    key = jax.random.PRNGKey(0)
    kp, kx1, kx2 = jax.random.split(key, 3)
    params = init_params(kp)

    # Case 1: N not divisible by 4 (exercises pad + lane-fold), default tiling.
    N1 = 200
    x1 = jax.random.normal(kx1, (N1, NUM_DIM), jnp.float32)
    out1 = jax.block_until_ready(mlp_forward(x1, params))
    ref1 = mlp_reference(x1, params)
    assert out1.shape == (N1, NUM_CLASS)
    assert jnp.allclose(out1, ref1, atol=5e-3, rtol=5e-3), \
        float(jnp.max(jnp.abs(out1 - ref1)))

    # Case 2: multi-step row grid with a clipped last block (forced small tile).
    N2 = 1000   # n4 = 250 folded rows; tile_rows=16 -> 16 grid steps, last clipped
    x2 = jax.random.normal(kx2, (N2, NUM_DIM), jnp.float32)
    out2 = jax.block_until_ready(mlp_forward(x2, params, tile_rows=16))
    ref2 = mlp_reference(x2, params)
    assert out2.shape == (N2, NUM_CLASS)
    assert jnp.allclose(out2, ref2, atol=5e-3, rtol=5e-3), \
        float(jnp.max(jnp.abs(out2 - ref2)))

    print("KERNEL_OK")
</pallas_src>

<mosaic_0001>
module attributes {stable_mosaic.version = 11 : i64} {
  func.func @mlp_kernel(%arg0: i32, %arg1: memref<50x128xf32, #tpu.memory_space<vmem>>, %arg2: memref<128x64xf32, #tpu.memory_space<vmem>>, %arg3: memref<1x64xf32, #tpu.memory_space<vmem>>, %arg4: memref<64x64xf32, #tpu.memory_space<vmem>>, %arg5: memref<1x64xf32, #tpu.memory_space<vmem>>, %arg6: memref<64x32xf32, #tpu.memory_space<vmem>>, %arg7: memref<1x32xf32, #tpu.memory_space<vmem>>, %arg8: memref<32x32xf32, #tpu.memory_space<vmem>>, %arg9: memref<50x32xf32, #tpu.memory_space<vmem>>) attributes {dimension_semantics = [#tpu.dimension_semantics<parallel>], iteration_bounds = array<i64: 1>, scalar_prefetch = 0 : i64, scratch_operands = 0 : i64, tpu.core_type = #tpu.core_type<tc>, window_params = [{transform_indices = @transform_0, window_bounds = array<i64: 50, 128>}, {pipeline_mode = #tpu.pipeline_mode<synchronous>, transform_indices = @transform_1, window_bounds = array<i64: 128, 64>}, {pipeline_mode = #tpu.pipeline_mode<synchronous>, transform_indices = @transform_2, window_bounds = array<i64: 1, 64>}, {pipeline_mode = #tpu.pipeline_mode<synchronous>, transform_indices = @transform_3, window_bounds = array<i64: 64, 64>}, {pipeline_mode = #tpu.pipeline_mode<synchronous>, transform_indices = @transform_4, window_bounds = array<i64: 1, 64>}, {pipeline_mode = #tpu.pipeline_mode<synchronous>, transform_indices = @transform_5, window_bounds = array<i64: 64, 32>}, {pipeline_mode = #tpu.pipeline_mode<synchronous>, transform_indices = @transform_6, window_bounds = array<i64: 1, 32>}, {pipeline_mode = #tpu.pipeline_mode<synchronous>, transform_indices = @transform_7, window_bounds = array<i64: 32, 32>}, {transform_indices = @transform_8, window_bounds = array<i64: 50, 32>}]} {
    %c0 = arith.constant 0 : index
    %c0_0 = arith.constant 0 : index
    %0 = vector.load %arg1[%c0, %c0_0] : memref<50x128xf32, #tpu.memory_space<vmem>>, vector<50x128xf32>
    %c0_1 = arith.constant 0 : index
    %c0_2 = arith.constant 0 : index
    %1 = vector.load %arg2[%c0_1, %c0_2] : memref<128x64xf32, #tpu.memory_space<vmem>>, vector<128x64xf32>
    %cst = arith.constant dense<0.000000e+00> : vector<50x64xf32>
    %2 = tpu.matmul %0, %1, %cst {dimension_numbers = #tpu.dot_dimension_numbers<[1], [0], [0], [1], [0, 0, 1, 1], [], []>} : vector<50x128xf32>, vector<128x64xf32>, vector<50x64xf32> -> vector<50x64xf32>
    %c0_3 = arith.constant 0 : index
    %c0_4 = arith.constant 0 : index
    %3 = vector.load %arg3[%c0_3, %c0_4] : memref<1x64xf32, #tpu.memory_space<vmem>>, vector<1x64xf32>
    %4 = vector.broadcast %3 : vector<1x64xf32> to vector<50x64xf32>
    %5 = arith.addf %2, %4 : vector<50x64xf32>
    %cst_5 = arith.constant 0.000000e+00 : f32
    %6 = vector.broadcast %cst_5 : f32 to vector<50x64xf32>
    %7 = arith.cmpf ogt, %5, %6 : vector<50x64xf32>
    %cst_6 = arith.constant 0.00999999977 : f32
    %8 = vector.broadcast %cst_6 : f32 to vector<50x64xf32>
    %9 = arith.mulf %8, %5 : vector<50x64xf32>
    %10 = arith.select %7, %5, %9 : vector<50x64xi1>, vector<50x64xf32>
    %c0_7 = arith.constant 0 : index
    %c0_8 = arith.constant 0 : index
    %11 = vector.load %arg4[%c0_7, %c0_8] : memref<64x64xf32, #tpu.memory_space<vmem>>, vector<64x64xf32>
    %cst_9 = arith.constant dense<0.000000e+00> : vector<50x64xf32>
    %12 = tpu.matmul %10, %11, %cst_9 {dimension_numbers = #tpu.dot_dimension_numbers<[1], [0], [0], [1], [0, 0, 1, 1], [], []>} : vector<50x64xf32>, vector<64x64xf32>, vector<50x64xf32> -> vector<50x64xf32>
    %c0_10 = arith.constant 0 : index
    %c0_11 = arith.constant 0 : index
    %13 = vector.load %arg5[%c0_10, %c0_11] : memref<1x64xf32, #tpu.memory_space<vmem>>, vector<1x64xf32>
    %14 = vector.broadcast %13 : vector<1x64xf32> to vector<50x64xf32>
    %15 = arith.addf %12, %14 : vector<50x64xf32>
    %cst_12 = arith.constant 0.000000e+00 : f32
    %16 = vector.broadcast %cst_12 : f32 to vector<50x64xf32>
    %17 = arith.cmpf ogt, %15, %16 : vector<50x64xf32>
    %cst_13 = arith.constant 0.00999999977 : f32
    %18 = vector.broadcast %cst_13 : f32 to vector<50x64xf32>
    %19 = arith.mulf %18, %15 : vector<50x64xf32>
    %20 = arith.select %17, %15, %19 : vector<50x64xi1>, vector<50x64xf32>
    %c0_14 = arith.constant 0 : index
    %c0_15 = arith.constant 0 : index
    %21 = vector.load %arg6[%c0_14, %c0_15] : memref<64x32xf32, #tpu.memory_space<vmem>>, vector<64x32xf32>
    %cst_16 = arith.constant dense<0.000000e+00> : vector<50x32xf32>
    %22 = tpu.matmul %20, %21, %cst_16 {dimension_numbers = #tpu.dot_dimension_numbers<[1], [0], [0], [1], [0, 0, 1, 1], [], []>} : vector<50x64xf32>, vector<64x32xf32>, vector<50x32xf32> -> vector<50x32xf32>
    %c0_17 = arith.constant 0 : index
    %c0_18 = arith.constant 0 : index
    %23 = vector.load %arg7[%c0_17, %c0_18] : memref<1x32xf32, #tpu.memory_space<vmem>>, vector<1x32xf32>
    %24 = vector.broadcast %23 : vector<1x32xf32> to vector<50x32xf32>
    %25 = arith.addf %22, %24 : vector<50x32xf32>
    %cst_19 = arith.constant dense<0xFF800000> : vector<50xf32>
    %26 = vector.multi_reduction <maximumf>, %25, %cst_19 [1] : vector<50x32xf32> to vector<50xf32>
    %27 = vector.shape_cast %26 : vector<50xf32> to vector<50x1xf32>
    %28 = vector.broadcast %27 : vector<50x1xf32> to vector<50x32xf32>
    %29 = arith.subf %25, %28 : vector<50x32xf32>
    %30 = math.exp %29 : vector<50x32xf32>
    %c0_20 = arith.constant 0 : index
    %c0_21 = arith.constant 0 : index
    %31 = vector.load %arg8[%c0_20, %c0_21] : memref<32x32xf32, #tpu.memory_space<vmem>>, vector<32x32xf32>
    %cst_22 = arith.constant dense<0.000000e+00> : vector<50x32xf32>
    %32 = tpu.matmul %30, %31, %cst_22 {dimension_numbers = #tpu.dot_dimension_numbers<[1], [0], [0], [1], [0, 0, 1, 1], [], []>} : vector<50x32xf32>, vector<32x32xf32>, vector<50x32xf32> -> vector<50x32xf32>
    %cst_23 = arith.constant 1.000000e-30 : f32
    %33 = vector.broadcast %cst_23 : f32 to vector<50x32xf32>
    %34 = arith.maximumf %32, %33 : vector<50x32xf32>
    %35 = math.log %34 : vector<50x32xf32>
    %36 = arith.subf %29, %35 : vector<50x32xf32>
    %c0_24 = arith.constant 0 : index
    %c0_25 = arith.constant 0 : index
    %37 = vector.load %arg9[%c0_24, %c0_25] : memref<50x32xf32, #tpu.memory_space<vmem>>, vector<50x32xf32>
    tpu.vector_store %arg9[%c0_24, %c0_25], %36 {strides = array<i32>} : memref<50x32xf32, #tpu.memory_space<vmem>>, vector<50x32xf32>,
    return
  }
  func.func @transform_0(%arg0: i32) -> (i32, i32) {
    %c0_i32 = arith.constant 0 : i32
    %c0_i32_0 = arith.constant 0 : i32
    return %arg0, %c0_i32 : i32, i32
  }
  func.func @transform_1(%arg0: i32) -> (i32, i32) {
    %c0_i32 = arith.constant 0 : i32
    %c0_i32_0 = arith.constant 0 : i32
    %c0_i32_1 = arith.constant 0 : i32
    return %c0_i32, %c0_i32_0 : i32, i32
  }
  func.func @transform_2(%arg0: i32) -> (i32, i32) {
    %c0_i32 = arith.constant 0 : i32
    %c0_i32_0 = arith.constant 0 : i32
    %c0_i32_1 = arith.constant 0 : i32
    return %c0_i32, %c0_i32_0 : i32, i32
  }
  func.func @transform_3(%arg0: i32) -> (i32, i32) {
    %c0_i32 = arith.constant 0 : i32
    %c0_i32_0 = arith.constant 0 : i32
    %c0_i32_1 = arith.constant 0 : i32
    return %c0_i32, %c0_i32_0 : i32, i32
  }
  func.func @transform_4(%arg0: i32) -> (i32, i32) {
    %c0_i32 = arith.constant 0 : i32
    %c0_i32_0 = arith.constant 0 : i32
    %c0_i32_1 = arith.constant 0 : i32
    return %c0_i32, %c0_i32_0 : i32, i32
  }
  func.func @transform_5(%arg0: i32) -> (i32, i32) {
    %c0_i32 = arith.constant 0 : i32
    %c0_i32_0 = arith.constant 0 : i32
    %c0_i32_1 = arith.constant 0 : i32
    return %c0_i32, %c0_i32_0 : i32, i32
  }
  func.func @transform_6(%arg0: i32) -> (i32, i32) {
    %c0_i32 = arith.constant 0 : i32
    %c0_i32_0 = arith.constant 0 : i32
    %c0_i32_1 = arith.constant 0 : i32
    return %c0_i32, %c0_i32_0 : i32, i32
  }
  func.func @transform_7(%arg0: i32) -> (i32, i32) {
    %c0_i32 = arith.constant 0 : i32
    %c0_i32_0 = arith.constant 0 : i32
    %c0_i32_1 = arith.constant 0 : i32
    return %c0_i32, %c0_i32_0 : i32, i32
  }
  func.func @transform_8(%arg0: i32) -> (i32, i32) {
    %c0_i32 = arith.constant 0 : i32
    %c0_i32_0 = arith.constant 0 : i32
    return %arg0, %c0_i32 : i32, i32
  }
}

</mosaic_0001>

<bundles_post_ra>
// kernel: tpu_custom_call.1
= control target key start
LH: loop header
LB: loop body
LE: loop exit
PB: predicated region body
PF: predicated region fallthrough
CT: control target
= control target key end

     0   :  { %v964_v0 = vmov 0.0   ;;  %vm965_vm0 = vmmov 0   ;;  %vm195_vm2 = vcmask 523264   ;;  %s1338_s1 = inlined_call_operand.vmem [shape: f32[128,64], index: 1, kind: input, shape index: {}]   ;;  %s1339_s3 = inlined_call_operand.vmem [shape: f32[64,64], index: 3, kind: input, shape index: {}]   ;;  %s1340_s0 = inlined_call_operand.vmem [shape: f32[50,128], index: 0, kind: input, shape index: {}]   ;;  %s1341_s2 = inlined_call_operand.vmem [shape: f32[1,64], index: 2, kind: input, shape index: {}]   ;;  %s1342_s5 = inlined_call_operand.vmem [shape: f32[64,32], index: 5, kind: input, shape index: {}]   ;;  %s1343_s4 = inlined_call_operand.vmem [shape: f32[1,64], index: 4, kind: input, shape index: {}]   ;;  %s1344_s7 = inlined_call_operand.vmem [shape: f32[32,32], index: 7, kind: input, shape index: {}]   ;;  %s1345_s6 = inlined_call_operand.vmem [shape: f32[1,32], index: 6, kind: input, shape index: {}]   ;;  %s1346_s8 = inlined_call_operand.vmem [shape: f32[50,32], index: 8, kind: output, shape index: {}]  }
   0x1   :  { %770 = vmatprep.subr.mxu0 %v964_v0  ;;  %v51_v1 = vld [vmem:[%s1338_s1 + $0x78] sm:$0xff]  ;;  %v50_v2 = vld [vmem:[%s1338_s1 + $0x70] sm:$0xff]  ;;  %802 = vmatprep.mubr.msk.f32.mxu0 %vm965_vm0, %v964_v0  ;;  %v49_v3 = vld [vmem:[%s1338_s1 + $0x68] sm:$0xff] }
   0x2   :  { %771 = vmatpush3.msra.mxu0 %v51_v1  ;;  %823 = vmatprep.subr.mxu1 %v964_v0  ;;  %v48_v4 = vld [vmem:[%s1338_s1 + $0x60] sm:$0xff]  ;;  %v47_v5 = vld [vmem:[%s1338_s1 + $0x58] sm:$0xff]  ;;  %v46_v7 = vld [vmem:[%s1338_s1 + $0x50] sm:$0xff] }
   0x3   :  { %772 = vmatprep.subr.mxu0 %v964_v0  ;;  %839 = vmatprep.mubr.msk.f32.mxu1 %vm965_vm0, %v964_v0  ;;  %v187_v6 = vld [vmem:[%s1339_s3 + $0x38] sm:$0xff]  ;;  %v186_v8 = vld [vmem:[%s1339_s3 + $0x30] sm:$0xff]  ;;  %v185_v9 = vld [vmem:[%s1339_s3 + $0x28] sm:$0xff] }
   0x4   :  { %773 = vmatpush3.msra.mxu0 %v50_v2  ;;  %824 = vmatpush3.msra.mxu1 %v187_v6  ;;  %v45_v10 = vld [vmem:[%s1338_s1 + $0x48] sm:$0xff]  ;;  %v184_v11 = vld [vmem:[%s1339_s3 + $0x20] sm:$0xff]  ;;  %v183_v13 = vld [vmem:[%s1339_s3 + $0x18] sm:$0xff] }
   0x5   :  { %774 = vmatprep.subr.mxu0 %v964_v0  ;;  %825 = vmatprep.subr.mxu1 %v964_v0  ;;  %v44_v12 = vld [vmem:[%s1338_s1 + $0x40] sm:$0xff]  ;;  %v43_v14 = vld [vmem:[%s1338_s1 + $0x38] sm:$0xff]  ;;  %v42_v15 = vld [vmem:[%s1338_s1 + $0x30] sm:$0xff] }
   0x6   :  { %775 = vmatpush3.msra.mxu0 %v49_v3  ;;  %826 = vmatpush3.msra.mxu1 %v186_v8  ;;  %v41_v16 = vld [vmem:[%s1338_s1 + $0x28] sm:$0xff]  ;;  %v40_v17 = vld [vmem:[%s1338_s1 + $0x20] sm:$0xff]  ;;  %v39_v18 = vld [vmem:[%s1338_s1 + $0x18] sm:$0xff] }
   0x7   :  { %776 = vmatprep.subr.mxu0 %v964_v0  ;;  %827 = vmatprep.subr.mxu1 %v964_v0  ;;  %v38_v19 = vld [vmem:[%s1338_s1 + $0x10] sm:$0xff]  ;;  %v37_v20 = vld [vmem:[%s1338_s1 + $0x8] sm:$0xff]  ;;  %v36_v21 = vld [vmem:[%s1338_s1] sm:$0xff] }
   0x8   :  { %777 = vmatpush3.msra.mxu0 %v48_v4  ;;  %828 = vmatpush3.msra.mxu1 %v185_v9  ;;  %v29_v22 = vld [vmem:[%s1340_s0] sm:$0xff]  ;;  %v30_v23 = vld [vmem:[%s1340_s0 + $0x8] sm:$0xff]  ;;  %v31_v24 = vld [vmem:[%s1340_s0 + $0x10] sm:$0xff] }
   0x9   :  { %778 = vmatprep.subr.mxu0 %v964_v0  ;;  %829 = vmatprep.subr.mxu1 %v964_v0  ;;  %v32_v25 = vld [vmem:[%s1340_s0 + $0x18] sm:$0xff]  ;;  %v33_v26 = vld [vmem:[%s1340_s0 + $0x20] sm:$0xff]  ;;  %v34_v27 = vld [vmem:[%s1340_s0 + $0x28] sm:$0xff] }
   0xa   :  { %779 = vmatpush3.msra.mxu0 %v47_v5  ;;  %830 = vmatpush3.msra.mxu1 %v184_v11  ;;  %v35_v28 = vld [vmem:[%s1340_s0 + $0x30] sm:$0x3]  ;;  %v181_v30 = vld [vmem:[%s1339_s3 + $0x8] sm:$0xff]  ;;  %v180_v31 = vld [vmem:[%s1339_s3] sm:$0xff] }
   0xb   :  { %780 = vmatprep.subr.mxu0 %v964_v0  ;;  %831 = vmatprep.subr.mxu1 %v964_v0  ;;  %v182_v29 = vld [vmem:[%s1339_s3 + $0x10] sm:$0xff]  ;;  %v1151_v32 = vld [vmem:[%s1341_s2] ss:$0 sm:$0xff]  ;;  %v345_v38 = vld [vmem:[%s1342_s5 + $0x38] sm:$0xff] }
   0xc   :  { %781 = vmatpush3.msra.mxu0 %v46_v7  ;;  %832 = vmatpush3.msra.mxu1 %v183_v13  ;;  %v344_v42 = vld [vmem:[%s1342_s5 + $0x30] sm:$0xff]  ;;  %v343_v45 = vld [vmem:[%s1342_s5 + $0x28] sm:$0xff]  ;;  %v342_v49 = vld [vmem:[%s1342_s5 + $0x20] sm:$0xff] }
   0xd   :  { %782 = vmatprep.subr.mxu0 %v964_v0  ;;  %833 = vmatprep.subr.mxu1 %v964_v0  ;;  %v341_v52 = vld [vmem:[%s1342_s5 + $0x18] sm:$0xff]  ;;  %v340_v56 = vld [vmem:[%s1342_s5 + $0x10] sm:$0xff]  ;;  %v339_v59 = vld [vmem:[%s1342_s5 + $0x8] sm:$0xff] }
   0xe   :  { %783 = vmatpush3.msra.mxu0 %v45_v10  ;;  %834 = vmatpush3.msra.mxu1 %v182_v29  ;;  %v683_v13 = vld [vmem:[%s1343_s4] ss:$0 sm:$0xff] }
   0xf   :  { %784 = vmatprep.subr.mxu0 %v964_v0  ;;  %835 = vmatprep.subr.mxu1 %v964_v0 }
  0x10   :  { %785 = vmatpush3.msra.mxu0 %v44_v12  ;;  %836 = vmatpush3.msra.mxu1 %v181_v30  ;;  %v338_v12 = vld [vmem:[%s1342_s5] sm:$0xff] }
  0x11   :  { %786 = vmatprep.subr.mxu0 %v964_v0  ;;  %837 = vmatprep.subr.mxu1 %v964_v0 }
  0x12   :  { %787 = vmatpush3.msra.mxu0 %v43_v14  ;;  %838 = vmatpush3.msra.mxu1 %v180_v31 }
  0x13   :  { %788 = vmatprep.subr.mxu0 %v964_v0  ;;  %860 = vmatprep.subr.mxu1 %v964_v0 }
  0x14   :  { %789 = vmatpush3.msra.mxu0 %v42_v15 }
  0x15   :  { %790 = vmatprep.subr.mxu0 %v964_v0 }
  0x16   :  { %791 = vmatpush3.msra.mxu0 %v41_v16 }
  0x17   :  { %792 = vmatprep.subr.mxu0 %v964_v0 }
  0x18   :  { %793 = vmatpush3.msra.mxu0 %v40_v17 }
  0x19   :  { %794 = vmatprep.subr.mxu0 %v964_v0 }
  0x1a   :  { %795 = vmatpush3.msra.mxu0 %v39_v18 }
  0x1b   :  { %796 = vmatprep.subr.mxu0 %v964_v0 }
  0x1c   :  { %797 = vmatpush3.msra.mxu0 %v38_v19 }
  0x1d   :  { %798 = vmatprep.subr.mxu0 %v964_v0 }
  0x1e   :  { %799 = vmatpush3.msra.mxu0 %v37_v20 }
  0x1f   :  { %800 = vmatprep.subr.mxu0 %v964_v0 }
  0x20   :  { %801 = vmatpush3.msra.mxu0 %v36_v21 }
  0x21   :  { %803 = vmatmul.mubr.f32.vlgmr.msra.gmra.mxu0 %v29_v22  ;;  %897 = vmatprep.subr.mxu0 %v964_v0 }
  0x22   :  { %805 = vmatprep.mubr.msk.f32.mxu0 %vm965_vm0, %v964_v0 }
  0x25   :  { %806 = vmatmul.mubr.f32.gmra.mxu0 %v30_v23 }
  0x26   :  { %808 = vmatprep.mubr.msk.f32.mxu0 %vm965_vm0, %v964_v0 }
  0x29   :  { %809 = vmatmul.mubr.f32.gmra.mxu0 %v31_v24 }
  0x2a   :  { %811 = vmatprep.mubr.msk.f32.mxu0 %vm965_vm0, %v964_v0 }
  0x2d   :  { %812 = vmatmul.mubr.f32.gmra.mxu0 %v32_v25 }
  0x2e   :  { %814 = vmatprep.mubr.msk.f32.mxu0 %vm965_vm0, %v964_v0 }
  0x31   :  { %815 = vmatmul.mubr.f32.gmra.mxu0 %v33_v26 }
  0x32   :  { %817 = vmatprep.mubr.msk.f32.mxu0 %vm965_vm0, %v964_v0 }
  0x35   :  { %818 = vmatmul.mubr.f32.gmra.mxu0 %v34_v27 }
  0x36   :  { %820 = vmatprep.mubr.msk.f32.mxu0 %vm965_vm0, %v964_v0 }
  0x39   :  { %821 = vmatmul.mubr.f32.gmra.mxu0 %v35_v28 }
  0x3a   :  { %905 = vmatprep.mubr.msk.f32.mxu0 %vm965_vm0, %v964_v0 }
  0xe1   :  { %v125_v33 = vpop.f32.mrf.mxu0 }
  0xe2   :  { %v126_v34 = vadd.f32 %v1151_v32, %v125_v33 }
  0xe3   :  { %v804_v35 = vpop.f32.mrf.mxu0 }
  0xe4   :  { %vm159_vm1 = vcmp.gt.f32.partialorder %v126_v34, 0.0  ;;  %v166_v36 = vmul.f32 0.01, %v126_v34 }
  0xe5   :  { %v130_v37 = vpop.f32.mrf.mxu0 }
  0xe6   :  { %v131_v39 = vadd.f32 %v1151_v32, %v130_v37  ;;  %v173_v40 = vsel %vm159_vm1, %v126_v34, %v166_v36  ;;  %vm474_vm1 = vcmask 261120  }
  0xe7   :  { %v807_v41 = vpop.f32.mrf.mxu0  ;;  %840 = vmatmul.mubr.msk.f32.vlgmr.msra.gmra.mxu1 %vm195_vm2, %v173_v40 }
  0xe8   :  { %vm160_vm3 = vcmp.gt.f32.partialorder %v131_v39, 0.0  ;;  %v167_v43 = vmul.f32 0.01, %v131_v39  ;;  %842 = vmatprep.mubr.msk.f32.mxu1 %vm965_vm0, %v964_v0  ;;  %861 = vmatpush3.msra.mxu1 %v345_v38 }
  0xe9   :  { %v135_v44 = vpop.f32.mrf.mxu0  ;;  %862 = vmatprep.subr.mxu1 %v964_v0 }
  0xea   :  { %v136_v46 = vadd.f32 %v1151_v32, %v135_v44  ;;  %v174_v47 = vsel %vm160_vm3, %v131_v39, %v167_v43  ;;  %863 = vmatpush3.msra.mxu1 %v344_v42 }
  0xeb   :  { %v810_v48 = vpop.f32.mrf.mxu0  ;;  %843 = vmatmul.mubr.msk.f32.gmra.mxu1 %vm195_vm2, %v174_v47  ;;  %864 = vmatprep.subr.mxu1 %v964_v0 }
  0xec   :  { %vm161_vm4 = vcmp.gt.f32.partialorder %v136_v46, 0.0  ;;  %v168_v50 = vmul.f32 0.01, %v136_v46  ;;  %845 = vmatprep.mubr.msk.f32.mxu1 %vm965_vm0, %v964_v0  ;;  %865 = vmatpush3.msra.mxu1 %v343_v45 }
  0xed   :  { %v140_v51 = vpop.f32.mrf.mxu0  ;;  %866 = vmatprep.subr.mxu1 %v964_v0 }
  0xee   :  { %v141_v53 = vadd.f32 %v1151_v32, %v140_v51  ;;  %v175_v54 = vsel %vm161_vm4, %v136_v46, %v168_v50  ;;  %867 = vmatpush3.msra.mxu1 %v342_v49  ;;  %v521_v49 = vld [vmem:[%s1344_s7 + $0x18] sm:$0xff]  ;;  %v691_v50 = vld [vmem:[%s1345_s6] ss:$0 sm:$0xff] }
  0xef   :  { %v813_v55 = vpop.f32.mrf.mxu0  ;;  %846 = vmatmul.mubr.msk.f32.gmra.mxu1 %vm195_vm2, %v175_v54  ;;  %868 = vmatprep.subr.mxu1 %v964_v0 }
  0xf0   :  { %vm162_vm5 = vcmp.gt.f32.partialorder %v141_v53, 0.0  ;;  %v169_v57 = vmul.f32 0.01, %v141_v53  ;;  %848 = vmatprep.mubr.msk.f32.mxu1 %vm965_vm0, %v964_v0  ;;  %869 = vmatpush3.msra.mxu1 %v341_v52 }
  0xf1   :  { %v145_v58 = vpop.f32.mrf.mxu0  ;;  %870 = vmatprep.subr.mxu1 %v964_v0  ;;  %898 = vmatpush3.msra.mxu0 %v521_v49 }
  0xf2   :  { %v146_v60 = vadd.f32 %v1151_v32, %v145_v58  ;;  %v176_v61 = vsel %vm162_vm5, %v141_v53, %v169_v57  ;;  %871 = vmatpush3.msra.mxu1 %v340_v56  ;;  %899 = vmatprep.subr.mxu0 %v964_v0 }
  0xf3   :  { %v816_v62 = vpop.f32.mrf.mxu0  ;;  %849 = vmatmul.mubr.msk.f32.gmra.mxu1 %vm195_vm2, %v176_v61  ;;  %872 = vmatprep.subr.mxu1 %v964_v0 }
  0xf4   :  { %vm163_vm6 = vcmp.gt.f32.partialorder %v146_v60, 0.0  ;;  %v170_v63 = vmul.f32 0.01, %v146_v60  ;;  %851 = vmatprep.mubr.msk.f32.mxu1 %vm965_vm0, %v964_v0  ;;  %873 = vmatpush3.msra.mxu1 %v339_v59 }
  0xf5   :  { %v150_v1 = vpop.f32.mrf.mxu0  ;;  %874 = vmatprep.subr.mxu1 %v964_v0 }
  0xf6   :  { %v151_v2 = vadd.f32 %v1151_v32, %v150_v1  ;;  %v177_v3 = vsel %vm163_vm6, %v146_v60, %v170_v63  ;;  %875 = vmatpush3.msra.mxu1 %v338_v12 }
  0xf7   :  { %v819_v4 = vpop.f32.mrf.mxu0  ;;  %852 = vmatmul.mubr.msk.f32.gmra.mxu1 %vm195_vm2, %v177_v3  ;;  %926 = vmatprep.subr.mxu1 %v964_v0 }
  0xf8   :  { %vm164_vm7 = vcmp.gt.f32.partialorder %v151_v2, 0.0  ;;  %v171_v5 = vmul.f32 0.01, %v151_v2  ;;  %854 = vmatprep.mubr.msk.f32.mxu1 %vm965_vm0, %v964_v0 }
  0xf9   :  { %v155_v6 = vpop.f32.mrf.mxu0 }
  0xfa   :  { %v156_v7 = vadd.f32 %v1151_v32, %v155_v6  ;;  %v178_v8 = vsel %vm164_vm7, %v151_v2, %v171_v5 }
  0xfb   :  { %v822_v9 = vpop.f32.mrf.mxu0  ;;  %855 = vmatmul.mubr.msk.f32.gmra.mxu1 %vm195_vm2, %v178_v8 }
  0xfc   :  { %vm165_vm8 = vcmp.gt.f32.partialorder %v156_v7, 0.0  ;;  %v172_v10 = vmul.f32 0.01, %v156_v7  ;;  %857 = vmatprep.mubr.msk.f32.mxu1 %vm965_vm0, %v964_v0 }
  0xfe   :  { %v179_v11 = vsel %vm165_vm8, %v156_v7, %v172_v10 }
  0xff   :  { %858 = vmatmul.mubr.msk.f32.gmra.mxu1 %vm195_vm2, %v179_v11  ;;  %v520_v11 = vld [vmem:[%s1344_s7 + $0x10] sm:$0xff] }
 0x100   :  { %876 = vmatprep.mubr.msk.f32.mxu1 %vm965_vm0, %v964_v0  ;;  %900 = vmatpush3.msra.mxu0 %v520_v11 }
 0x101   :  { %901 = vmatprep.subr.mxu0 %v964_v0 }
 0x1a7   :  { %v283_v14 = vpop.f32.mrf.mxu1 }
 0x1a8   :  { %v284_v15 = vadd.f32 %v683_v13, %v283_v14 }
 0x1a9   :  { %v841_v16 = vpop.f32.mrf.mxu1 }
 0x1aa   :  { %vm317_vm9 = vcmp.gt.f32.partialorder %v284_v15, 0.0  ;;  %v324_v17 = vmul.f32 0.01, %v284_v15 }
 0x1ab   :  { %v288_v18 = vpop.f32.mrf.mxu1 }
 0x1ac   :  { %v331_v19 = vsel %vm317_vm9, %v284_v15, %v324_v17  ;;  %v289_v20 = vadd.f32 %v683_v13, %v288_v18  ;;  %v519_v17 = vld [vmem:[%s1344_s7 + $0x8] sm:$0xff]  ;;  %v518_v18 = vld [vmem:[%s1344_s7] sm:$0xff] }
 0x1ad   :  { %v844_v21 = vpop.f32.mrf.mxu1  ;;  %877 = vmatmul.mubr.msk.f32.vlgmr.msra.gmra.mxu1 %vm195_vm2, %v331_v19  ;;  %902 = vmatpush3.msra.mxu0 %v519_v17 }
 0x1ae   :  { %vm318_vm10 = vcmp.gt.f32.partialorder %v289_v20, 0.0  ;;  %v325_v22 = vmul.f32 0.01, %v289_v20  ;;  %879 = vmatprep.mubr.msk.f32.mxu1 %vm965_vm0, %v964_v0  ;;  %930 = vmatpush3.msra.mxu1 %v521_v49 }
 0x1af   :  { %v293_v23 = vpop.f32.mrf.mxu1  ;;  %927 = vmatprep.subr.mxu1 %v964_v0  ;;  %903 = vmatprep.subr.mxu0 %v964_v0 }
 0x1b0   :  { %v294_v24 = vadd.f32 %v683_v13, %v293_v23  ;;  %v332_v25 = vsel %vm318_vm10, %v289_v20, %v325_v22  ;;  %931 = vmatpush3.msra.mxu1 %v520_v11  ;;  %904 = vmatpush3.msra.mxu0 %v518_v18 }
 0x1b1   :  { %v847_v26 = vpop.f32.mrf.mxu1  ;;  %880 = vmatmul.mubr.msk.f32.gmra.mxu1 %vm195_vm2, %v332_v25  ;;  %928 = vmatprep.subr.mxu1 %v964_v0 }
 0x1b2   :  { %vm319_vm11 = vcmp.gt.f32.partialorder %v294_v24, 0.0  ;;  %v326_v27 = vmul.f32 0.01, %v294_v24  ;;  %882 = vmatprep.mubr.msk.f32.mxu1 %vm965_vm0, %v964_v0  ;;  %932 = vmatpush3.msra.mxu1 %v519_v17 }
 0x1b3   :  { %v298_v28 = vpop.f32.mrf.mxu1  ;;  %929 = vmatprep.subr.mxu1 %v964_v0 }
 0x1b4   :  { %v299_v29 = vadd.f32 %v683_v13, %v298_v28  ;;  %v333_v30 = vsel %vm319_vm11, %v294_v24, %v326_v27  ;;  %933 = vmatpush3.msra.mxu1 %v518_v18 }
 0x1b5   :  { %v850_v31 = vpop.f32.mrf.mxu1  ;;  %883 = vmatmul.mubr.msk.f32.gmra.mxu1 %vm195_vm2, %v333_v30 }
 0x1b6   :  { %vm320_vm12 = vcmp.gt.f32.partialorder %v299_v29, 0.0  ;;  %v327_v32 = vmul.f32 0.01, %v299_v29  ;;  %885 = vmatprep.mubr.msk.f32.mxu1 %vm965_vm0, %v964_v0 }
 0x1b7   :  { %v303_v33 = vpop.f32.mrf.mxu1 }
 0x1b8   :  { %v304_v34 = vadd.f32 %v683_v13, %v303_v33  ;;  %v334_v35 = vsel %vm320_vm12, %v299_v29, %v327_v32 }
 0x1b9   :  { %v853_v36 = vpop.f32.mrf.mxu1  ;;  %886 = vmatmul.mubr.msk.f32.gmra.mxu1 %vm195_vm2, %v334_v35 }
 0x1ba   :  { %vm321_vm13 = vcmp.gt.f32.partialorder %v304_v34, 0.0  ;;  %v328_v37 = vmul.f32 0.01, %v304_v34  ;;  %888 = vmatprep.mubr.msk.f32.mxu1 %vm965_vm0, %v964_v0 }
 0x1bb   :  { %v308_v38 = vpop.f32.mrf.mxu1 }
 0x1bc   :  { %v309_v39 = vadd.f32 %v683_v13, %v308_v38  ;;  %v335_v40 = vsel %vm321_vm13, %v304_v34, %v328_v37 }
 0x1bd   :  { %v856_v41 = vpop.f32.mrf.mxu1  ;;  %889 = vmatmul.mubr.msk.f32.gmra.mxu1 %vm195_vm2, %v335_v40 }
 0x1be   :  { %vm322_vm14 = vcmp.gt.f32.partialorder %v309_v39, 0.0  ;;  %v329_v42 = vmul.f32 0.01, %v309_v39  ;;  %891 = vmatprep.mubr.msk.f32.mxu1 %vm965_vm0, %v964_v0 }
 0x1bf   :  { %v313_v43 = vpop.f32.mrf.mxu1 }
 0x1c0   :  { %v314_v44 = vadd.f32 %v683_v13, %v313_v43  ;;  %v336_v45 = vsel %vm322_vm14, %v309_v39, %v329_v42 }
 0x1c1   :  { %v859_v46 = vpop.f32.mrf.mxu1  ;;  %892 = vmatmul.mubr.msk.f32.gmra.mxu1 %vm195_vm2, %v336_v45 }
 0x1c2   :  { %vm323_vm15 = vcmp.gt.f32.partialorder %v314_v44, 0.0  ;;  %v330_v47 = vmul.f32 0.01, %v314_v44  ;;  %894 = vmatprep.mubr.msk.f32.mxu1 %vm965_vm0, %v964_v0 }
 0x1c4   :  { %v337_v48 = vsel %vm323_vm15, %v314_v44, %v330_v47 }
 0x1c5   :  { %895 = vmatmul.mubr.msk.f32.gmra.mxu1 %vm195_vm2, %v337_v48  ;;  %vm493_vm2 = vcmask 254976  }
 0x1c6   :  { %920 = vmatprep.mubr.msk.f32.mxu1 %vm965_vm0, %v964_v0 }
 0x26d   :  { %v440_v51 = vpop.f32.mrf.mxu1 }
 0x26e   :  { %v441_v52 = vadd.f32 %v691_v50, %v440_v51 }
 0x26f   :  { %v878_v53 = vpop.f32.mrf.mxu1 }
 0x270   :  { %v475_v54 = vsel %vm474_vm1, %v441_v52, -inf }
 0x271   :  { %476 = vmax.xlane.f32.xlu0 %v475_v54  ;;  %v445_v55 = vpop.f32.mrf.mxu1 }
 0x272   :  { %v446_v56 = vadd.f32 %v691_v50, %v445_v55 }
 0x273   :  { %v881_v57 = vpop.f32.mrf.mxu1 }
 0x274   :  { %v478_v58 = vsel %vm474_vm1, %v446_v56, -inf }
 0x275   :  { %479 = vmax.xlane.f32.xlu0 %v478_v58  ;;  %v450_v59 = vpop.f32.mrf.mxu1 }
 0x276   :  { %v451_v60 = vadd.f32 %v691_v50, %v450_v59 }
 0x277   :  { %v884_v61 = vpop.f32.mrf.mxu1 }
 0x278   :  { %v481_v62 = vsel %vm474_vm1, %v451_v60, -inf }
 0x279   :  { %482 = vmax.xlane.f32.xlu1 %v481_v62  ;;  %v455_v63 = vpop.f32.mrf.mxu1 }
 0x27a   :  { %v456_v1 = vadd.f32 %v691_v50, %v455_v63 }
 0x27b   :  { %v887_v2 = vpop.f32.mrf.mxu1 }
 0x27c   :  { %v484_v3 = vsel %vm474_vm1, %v456_v1, -inf }
 0x27d   :  { %485 = vmax.xlane.f32.xlu1 %v484_v3  ;;  %v460_v4 = vpop.f32.mrf.mxu1 }
 0x27e   :  { %v461_v5 = vadd.f32 %v691_v50, %v460_v4 }
 0x27f   :  { %v890_v6 = vpop.f32.mrf.mxu1 }
 0x280   :  { %v487_v7 = vsel %vm474_vm1, %v461_v5, -inf }
 0x281   :  { %488 = vmax.xlane.f32.xlu1 %v487_v7  ;;  %v465_v8 = vpop.f32.mrf.mxu1 }
 0x282   :  { %v466_v9 = vadd.f32 %v691_v50, %v465_v8 }
 0x283   :  { %v893_v10 = vpop.f32.mrf.mxu1 }
 0x284   :  { %v490_v12 = vsel %vm474_vm1, %v466_v9, -inf }
 0x285   :  { %491 = vmax.xlane.f32.xlu0 %v490_v12  ;;  %v470_v13 = vpop.f32.mrf.mxu1 }
 0x286   :  { %v471_v14 = vadd.f32 %v691_v50, %v470_v13 }
 0x287   :  { %v896_v15 = vpop.f32.mrf.mxu1 }
 0x288   :  { %v494_v16 = vsel %vm493_vm2, %v471_v14, -inf }
 0x289   :  { %495 = vmax.xlane.f32.xlu0 %v494_v16 }
 0x2fa   :  { %v477_v19 = vpop.xlane.xlu0 %476 }
 0x2fb   :  { %v1265_v20 = vsub.f32 %v441_v52, %v477_v19 }
 0x2fd   :  { %v504_v21 = vmul.f32 1.442695, %v1265_v20 }
 0x2fe   :  { %v480_v22 = vpop.xlane.xlu0 %479 }
 0x2ff   :  { %936 = vpow2.f32 %v504_v21  ;;  %v1268_v23 = vsub.f32 %v446_v56, %v480_v22 }
 0x301   :  { %v506_v24 = vmul.f32 1.442695, %v1268_v23 }
 0x302   :  { %v483_v25 = vpop.xlane.xlu1 %482 }
 0x303   :  { %938 = vpow2.f32 %v506_v24  ;;  %v1271_v26 = vsub.f32 %v451_v60, %v483_v25 }
 0x305   :  { %v508_v27 = vmul.f32 1.442695, %v1271_v26 }
 0x306   :  { %v486_v28 = vpop.xlane.xlu1 %485 }
 0x307   :  { %940 = vpow2.f32 %v508_v27  ;;  %v1274_v29 = vsub.f32 %v456_v1, %v486_v28 }
 0x309   :  { %v510_v30 = vmul.f32 1.442695, %v1274_v29 }
 0x30a   :  { %v489_v31 = vpop.xlane.xlu1 %488 }
 0x30b   :  { %942 = vpow2.f32 %v510_v30  ;;  %v1277_v32 = vsub.f32 %v461_v5, %v489_v31 }
 0x30c   :  { %v937_v33 = vpop.eup %936 }
 0x30d   :  { %v512_v34 = vmul.f32 1.442695, %v1277_v32  ;;  %906 = vmatmul.mubr.msk.f32.vlgmr.msra.gmra.mxu0 %vm474_vm1, %v937_v33 }
 0x30e   :  { %v492_v35 = vpop.xlane.xlu0 %491  ;;  %908 = vmatprep.mubr.msk.f32.mxu0 %vm965_vm0, %v964_v0 }
 0x30f   :  { %944 = vpow2.f32 %v512_v34  ;;  %v1283_v36 = vsub.f32 %v466_v9, %v492_v35 }
 0x310   :  { %v939_v37 = vpop.eup %938 }
 0x311   :  { %v514_v38 = vmul.f32 1.442695, %v1283_v36  ;;  %909 = vmatmul.mubr.msk.f32.gmra.mxu0 %vm474_vm1, %v939_v37 }
 0x312   :  { %v496_v39 = vpop.xlane.xlu0 %495  ;;  %911 = vmatprep.mubr.msk.f32.mxu0 %vm965_vm0, %v964_v0 }
 0x313   :  { %946 = vpow2.f32 %v514_v38  ;;  %v1289_v40 = vsub.f32 %v471_v14, %v496_v39 }
 0x314   :  { %v941_v41 = vpop.eup %940 }
 0x315   :  { %v516_v42 = vmul.f32 1.442695, %v1289_v40  ;;  %912 = vmatmul.mubr.msk.f32.gmra.mxu0 %vm474_vm1, %v941_v41 }
 0x316   :  { %914 = vmatprep.mubr.msk.f32.mxu0 %vm965_vm0, %v964_v0 }
 0x317   :  { %948 = vpow2.f32 %v516_v42 }
 0x318   :  { %v943_v43 = vpop.eup %942 }
 0x319   :  { %915 = vmatmul.mubr.msk.f32.gmra.mxu0 %vm474_vm1, %v943_v43 }
 0x31a   :  { %917 = vmatprep.mubr.msk.f32.mxu0 %vm965_vm0, %v964_v0 }
 0x31c   :  { %v945_v44 = vpop.eup %944 }
 0x31d   :  { %918 = vmatmul.mubr.msk.f32.gmra.mxu0 %vm474_vm1, %v945_v44 }
 0x320   :  { %v947_v45 = vpop.eup %946 }
 0x321   :  { %921 = vmatmul.mubr.msk.f32.vlgmr.msra.gmra.mxu1 %vm474_vm1, %v947_v45 }
 0x322   :  { %923 = vmatprep.mubr.msk.f32.mxu1 %vm965_vm0, %v964_v0 }
 0x324   :  { %v949_v46 = vpop.eup %948 }
 0x325   :  { %924 = vmatmul.mubr.msk.f32.gmra.mxu1 %vm474_vm1, %v949_v46 }
 0x3cd   :  { %v609_v47 = vpop.f32.mrf.mxu0 }
 0x3ce   :  { %v643_v48 = vmax.f32 %v609_v47, 1e-30 }
 0x3cf   :  { %v907_v49 = vpop.f32.mrf.mxu0 }
 0x3d0   :  { %950 = vlog2.f32 %v643_v48 }
 0x3d1   :  { %v614_v50 = vpop.f32.mrf.mxu0 }
 0x3d2   :  { %v644_v51 = vmax.f32 %v614_v50, 1e-30 }
 0x3d3   :  { %v910_v52 = vpop.f32.mrf.mxu0 }
 0x3d4   :  { %952 = vlog2.f32 %v644_v51 }
 0x3d5   :  { %v619_v53 = vpop.f32.mrf.mxu0 }
 0x3d6   :  { %v645_v54 = vmax.f32 %v619_v53, 1e-30 }
 0x3d7   :  { %v913_v55 = vpop.f32.mrf.mxu0 }
 0x3d8   :  { %954 = vlog2.f32 %v645_v54 }
 0x3d9   :  { %v624_v56 = vpop.f32.mrf.mxu0 }
 0x3da   :  { %v646_v57 = vmax.f32 %v624_v56, 1e-30 }
 0x3db   :  { %v916_v58 = vpop.f32.mrf.mxu0 }
 0x3dc   :  { %956 = vlog2.f32 %v646_v57 }
 0x3dd   :  { %v951_v0 = vpop.eup %950  ;;  %v629_v59 = vpop.f32.mrf.mxu0 }
 0x3de   :  { %v651_v60 = vmul.f32 0.6931472, %v951_v0  ;;  %v647_v61 = vmax.f32 %v629_v59, 1e-30 }
 0x3df   :  { %v919_v62 = vpop.f32.mrf.mxu0 }
 0x3e0   :  { %v664_v63 = vsub.f32 %v1265_v20, %v651_v60  ;;  %958 = vlog2.f32 %v647_v61 }
 0x3e1   :  { %v953_v1 = vpop.eup %952  ;;  %v634_v2 = vpop.f32.mrf.mxu1 }
 0x3e2   :  { %671 = vst.msk [vmem:[%s1346_s8] sm:$0xff] %vm474_vm1, %v664_v63  ;;  %v653_v3 = vmul.f32 0.6931472, %v953_v1  ;;  %v648_v4 = vmax.f32 %v634_v2, 1e-30 }
 0x3e3   :  { %v922_v5 = vpop.f32.mrf.mxu1 }
 0x3e4   :  { %v665_v6 = vsub.f32 %v1268_v23, %v653_v3  ;;  %960 = vlog2.f32 %v648_v4 }
 0x3e5   :  { %v955_v7 = vpop.eup %954  ;;  %v639_v8 = vpop.f32.mrf.mxu1 }
 0x3e6   :  { %672 = vst.msk [vmem:[%s1346_s8 + $0x8] sm:$0xff] %vm474_vm1, %v665_v6  ;;  %v655_v9 = vmul.f32 0.6931472, %v955_v7  ;;  %v649_v10 = vmax.f32 %v639_v8, 1e-30 }
 0x3e7   :  { %v925_v11 = vpop.f32.mrf.mxu1 }
 0x3e8   :  { %v666_v12 = vsub.f32 %v1271_v26, %v655_v9  ;;  %962 = vlog2.f32 %v649_v10 }
 0x3e9   :  { %v957_v13 = vpop.eup %956 }
 0x3ea   :  { %673 = vst.msk [vmem:[%s1346_s8 + $0x10] sm:$0xff] %vm474_vm1, %v666_v12  ;;  %v657_v14 = vmul.f32 0.6931472, %v957_v13 }
 0x3ec   :  { %v667_v15 = vsub.f32 %v1274_v29, %v657_v14 }
 0x3ed   :  { %v959_v16 = vpop.eup %958 }
 0x3ee   :  { %674 = vst.msk [vmem:[%s1346_s8 + $0x18] sm:$0xff] %vm474_vm1, %v667_v15  ;;  %v659_v17 = vmul.f32 0.6931472, %v959_v16 }
 0x3f0   :  { %v668_v18 = vsub.f32 %v1277_v32, %v659_v17 }
 0x3f1   :  { %v961_v19 = vpop.eup %960 }
 0x3f2   :  { %675 = vst.msk [vmem:[%s1346_s8 + $0x20] sm:$0xff] %vm474_vm1, %v668_v18  ;;  %v661_v20 = vmul.f32 0.6931472, %v961_v19 }
 0x3f4   :  { %v669_v21 = vsub.f32 %v1283_v36, %v661_v20 }
 0x3f5   :  { %v963_v22 = vpop.eup %962 }
 0x3f6   :  { %676 = vst.msk [vmem:[%s1346_s8 + $0x28] sm:$0xff] %vm474_vm1, %v669_v21  ;;  %v663_v23 = vmul.f32 0.6931472, %v963_v22 }
 0x3f8   :  { %v670_v24 = vsub.f32 %v1289_v40, %v663_v23 }
 0x3fa   :  { %677 = vst.msk [vmem:[%s1346_s8 + $0x30] sm:$0x3] %vm493_vm2, %v670_v24 }

</bundles_post_ra>
